<compile_context>
chip_gen: v5e
topology: v5e:2x2
jax: 0.10.0
libtpu: 0.0.40
codegen_flags: <defaults>
</compile_context>

<pallas_src>
import functools

import numpy as np

import jax
import jax.numpy as jnp
from jax import lax
from jax.experimental import pallas as pl
from jax.experimental.pallas import tpu as pltpu


# ---------------------------------------------------------------------------
# pltpu.roll rotation-direction calibration (one tiny probe kernel, cached).
# We want roll(x, s)[..., i] == x[..., (i - s) % N] (jnp.roll convention);
# if the installed jax rotates the other way we flip the shift sign.
# ---------------------------------------------------------------------------
def _roll_probe_kernel(x_ref, o_ref):
    o_ref[...] = pltpu.roll(x_ref[...], 1, 1)


@functools.lru_cache(maxsize=1)
def _roll_matches_jnp():
    x = jnp.broadcast_to(lax.iota(jnp.float32, 128), (8, 128))
    y = pl.pallas_call(
        _roll_probe_kernel,
        out_shape=jax.ShapeDtypeStruct((8, 128), jnp.float32),
    )(x)
    v = float(jax.block_until_ready(y)[0, 0])
    if v == 127.0:      # jnp.roll convention
        return True
    if v == 1.0:        # opposite rotation direction
        return False
    return True         # unexpected: default to jnp convention


# ---------------------------------------------------------------------------
# Kernel: one batch element, lane-dense (C, H*W) layout.
# ---------------------------------------------------------------------------
def _atrous_conv_kernel(x_ref, w_ref, m_ref, b_ref, o_ref, *,
                        shifts, cout, apply_mask, cast_bf16):
    # x_ref: (1, Cin, P)    w_ref: (T*Cout, Cin)   m_ref: (T*Cout, P)
    # b_ref: (Cout, 1)      o_ref: (1, Cout, P)    P = H*W (lane axis)
    x = x_ref[0]                                                   # (Cin, P)
    w = w_ref[...]
    if cast_bf16:  # optional: halves MXU passes / DMA bytes on v6e/v7x
        x = x.astype(jnp.bfloat16)
        w = w.astype(jnp.bfloat16)

    # One fat MXU matmul: every active tap stacked on the M axis.
    y = jnp.dot(w, x, preferred_element_type=jnp.float32)         # (T*Cout, P)

    if apply_mask:
        # Fused "same"-padding mask multiply in SOURCE-lane space, so the
        # per-tap loop below is just roll + add (no per-tap mask broadcasts).
        y = y * m_ref[...]

    P = y.shape[-1]
    # Bias folded into the accumulator init.
    acc = jnp.broadcast_to(b_ref[...].astype(jnp.float32), (cout, P))
    for t, shift in enumerate(shifts):                 # static Python unroll
        y_t = y[t * cout:(t + 1) * cout, :]                       # (Cout, P)
        if shift != 0:
            # out[:, p] += y_t[:, p + s]  -> XLU lane roll (near-free slot)
            y_t = pltpu.roll(y_t, shift, 1)
        acc = acc + y_t                                           # VPU slot
    o_ref[0] = acc.astype(o_ref.dtype)


# ---------------------------------------------------------------------------
# Wrapper == Atrous_Convolution.forward
# ---------------------------------------------------------------------------
def atrous_convolution(x, weight, bias, *, kernel, dilation_rate, stride=1,
                       cast_bf16=False):
    """x: (N, Cin, H, W) NCHW, weight: (Cout, Cin, k, k), bias: (Cout,).
    Equivalent to nn.Conv2d(Cin, Cout, k, padding=dilation*(k-1)//2,
    stride=stride, dilation=dilation_rate, bias=True)."""
    N, Cin, H, W = x.shape
    Cout = weight.shape[0]
    pad = dilation_rate * (kernel - 1) // 2
    P = H * W

    # Active taps: statically drop taps whose offset lies entirely in the zero
    # padding (for dilation >= H only the center tap survives).
    taps = []
    for ky in range(kernel):
        for kx in range(kernel):
            dy = ky * dilation_rate - pad
            dx = kx * dilation_rate - pad
            if -H < dy < H and -W < dx < W:
                taps.append((ky, kx, dy, dx))
    assert taps, "degenerate conv: every tap lies in the zero padding"
    T = len(taps)

    # Stacked tap weights: (T*Cout, Cin) -> one MXU matmul per batch element.
    w_stack = jnp.concatenate(
        [weight[:, :, ky, kx] for ky, kx, _, _ in taps], axis=0)

    # Per-tap flat lane shift + precomputed SOURCE-lane validity masks,
    # pre-broadcast to (T*Cout, P) so the kernel does ONE fused multiply.
    roll_is_jnp = _roll_matches_jnp()
    shifts = []
    masks = np.ones((T, Cout, P), np.float32)
    oy = np.arange(H)[:, None]
    ox = np.arange(W)[None, :]
    for t, (_, _, dy, dx) in enumerate(taps):
        s = dy * W + dx                         # out[p] uses in[p + s]
        shifts.append(((-s) % P) if roll_is_jnp else (s % P))
        valid = ((oy + dy >= 0) & (oy + dy < H) &
                 (ox + dx >= 0) & (ox + dx < W)).reshape(-1)   # output-lane
        # source-lane mask: m_src[q] = valid[(q - s) % P]
        masks[t, :, :] = np.roll(valid, s).astype(np.float32)
    masks = masks.reshape(T * Cout, P)
    apply_mask = bool((masks != 1.0).any())     # False <=> center-tap only

    x_flat = x.reshape(N, Cin, P)               # free reshape (NCHW native)
    b2 = bias.reshape(Cout, 1)
    masks = jnp.asarray(masks)

    kern = functools.partial(_atrous_conv_kernel, shifts=tuple(shifts),
                             cout=Cout, apply_mask=apply_mask,
                             cast_bf16=cast_bf16)

    out = pl.pallas_call(
        kern,
        out_shape=jax.ShapeDtypeStruct((N, Cout, P), x.dtype),
        grid=(N,),
        in_specs=[pl.BlockSpec((1, Cin, P), lambda n: (n, 0, 0)),
                  pl.BlockSpec((T * Cout, Cin), lambda n: (0, 0)),
                  pl.BlockSpec((T * Cout, P), lambda n: (0, 0)),
                  pl.BlockSpec((Cout, 1), lambda n: (0, 0))],
        out_specs=pl.BlockSpec((1, Cout, P), lambda n: (n, 0, 0)),
        compiler_params=pltpu.CompilerParams(
            dimension_semantics=("parallel",)),
    )(x_flat, w_stack, masks, b2)

    out = out.reshape(N, Cout, H, W)
    if stride > 1:
        # With padding = d*(k-1)//2, strided conv == every stride-th output
        # position of the stride-1 result.
        # TODO(synk): compute only the strided positions for stride > 1.
        out = out[:, :, ::stride, ::stride]
    return out


# ---------------------------------------------------------------------------
# Pure-JAX reference (same math as the PyTorch module).
# ---------------------------------------------------------------------------
def atrous_convolution_ref(x, weight, bias, *, kernel, dilation_rate, stride=1):
    pad = dilation_rate * (kernel - 1) // 2
    y = lax.conv_general_dilated(
        x, weight, (stride, stride), [(pad, pad), (pad, pad)],
        rhs_dilation=(dilation_rate, dilation_rate),
        dimension_numbers=("NCHW", "OIHW", "NCHW"),
        precision=lax.Precision.HIGHEST)
    return y + bias[None, :, None, None]


# ---------------------------------------------------------------------------
if __name__ == "__main__":
    key = jax.random.PRNGKey(0)
    N, CIN, COUT, H, W, K = 2, 4, 8, 16, 16, 3

    # dilation=2: all 9 taps active (partially masked at borders);
    # dilation=16 (>= H): exercises the static tap-skip / mask-skip path
    # (center tap only).
    for dil in (2, 16):
        kx_, kw_, kb_, key = jax.random.split(key, 4)
        x = jax.random.normal(kx_, (N, CIN, H, W), jnp.float32)   # NCHW
        w = jax.random.normal(kw_, (COUT, CIN, K, K), jnp.float32) * 0.1
        b = jax.random.normal(kb_, (COUT,), jnp.float32) * 0.1

        y = atrous_convolution(x, w, b, kernel=K, dilation_rate=dil)
        y = jax.block_until_ready(y)
        assert y.shape == (N, COUT, H, W)

        y_ref = atrous_convolution_ref(x, w, b, kernel=K, dilation_rate=dil)
        err = float(jnp.max(jnp.abs(y - y_ref)))
        if not err < 2e-2:
            raise AssertionError(
                f"Pallas/reference mismatch (dilation={dil}): "
                f"max abs err = {err}")

    print("KERNEL_OK")
</pallas_src>

<mosaic_0001>
module attributes {stable_mosaic.version = 11 : i64} {
  func.func @_roll_probe_kernel(%arg0: memref<8x128xf32, #tpu.memory_space<vmem>>, %arg1: memref<8x128xf32, #tpu.memory_space<vmem>>) attributes {dimension_semantics = [], scalar_prefetch = 0 : i64, scratch_operands = 0 : i64, tpu.core_type = #tpu.core_type<tc>} {
    %c0 = arith.constant 0 : index
    %c0_0 = arith.constant 0 : index
    %0 = vector.load %arg0[%c0, %c0_0] : memref<8x128xf32, #tpu.memory_space<vmem>>, vector<8x128xf32>
    %c1_i32 = arith.constant 1 : i32
    %1 = tpu.dynamic_rotate %0 by %c1_i32 dim 1 : vector<8x128xf32>, i32 -> vector<8x128xf32>
    %c0_1 = arith.constant 0 : index
    %c0_2 = arith.constant 0 : index
    %2 = vector.load %arg1[%c0_1, %c0_2] : memref<8x128xf32, #tpu.memory_space<vmem>>, vector<8x128xf32>
    tpu.vector_store %arg1[%c0_1, %c0_2], %1 {strides = array<i32>} : memref<8x128xf32, #tpu.memory_space<vmem>>, vector<8x128xf32>,
    return
  }
}

</mosaic_0001>

<bundles_post_ra>
// kernel: tpu_custom_call.1
= control target key start
LH: loop header
LB: loop body
LE: loop exit
PB: predicated region body
PF: predicated region fallthrough
CT: control target
= control target key end

     0   :  { %6 = vsyncpa [#allocation3], 0  ;;  %s118_s0 = inlined_call_operand.hbm [shape: f32[8,128], index: 0, kind: input, shape index: {}]   ;;  %s119_s1 = inlined_call_operand.hbm [shape: f32[8,128], index: 1, kind: output, shape index: {}]  }
   0x1   :  { %7 = vsyncpa [#allocation4], 0  ;;  %s13_s8 = sshll.u32 %s118_s0, 4  ;;  %s99_s9 = smov [#allocation2]   ;;  %s14_s8 = int_to_ptr.hbm [resolvable:$true] %s13_s8 }
   0x2   :  { %s15_s10 = sshll.u32 %s99_s9, 4  ;;  %s16_s10 = int_to_ptr.vmem [resolvable:$true] %s15_s10 }
   0x3   :  { %18 = dma.hbm_to_vmem [thread:$0]  %s14_s8, 128, %s16_s10, [#allocation3]  }
   0x4   :  { %95 = dma.done.wait [#allocation3], 128  }
   0x5   :  { %96 = vsyncadd [#allocation3], 4294967168  ;;  %v23_v0 = vld [vmem:[#allocation2] sm:$0xff]  ;;  %s100_s11 = smov 1   ;;  %s101_s12 = smov [#allocation5]  }
   0x6   :  { %24 = vrot.lane.b32.xlu0 %v23_v0, %s100_s11  ;;  %s32_s13 = sshll.u32 %s101_s12, 4  ;;  %s34_s16 = sshll.u32 %s119_s1, 4  ;;  %s33_s13 = int_to_ptr.vmem [resolvable:$true] %s32_s13  ;;  %s35_s16 = int_to_ptr.hbm [resolvable:$true] %s34_s16 }
  0x78   :  { %v25_v1 = vpop.permute.xlu0 %24 }
  0x79   :  { %26 = vst [vmem:[#allocation5] sm:$0xff] %v25_v1 }
  0x7a   :  { %37 = dma.vmem_to_hbm [thread:$0]  %s33_s13, 128, %s35_s16, [#allocation4]  }
  0x7b   :  { %97 = dma.done.wait [#allocation4], 128  }
  0x7c   :  { %98 = vsyncadd [#allocation4], 4294967168 }
  0x7d   :  { %42 = vsyncpa [#allocation3], 1 }
  0x7e   :  { %43 = vsyncpa [#allocation4], 1 }

</bundles_post_ra>
